<compile_context>
chip_gen: v6e
topology: v6e:2x2x1
jax: 0.10.0
libtpu: 0.0.40
codegen_flags: <defaults>
</compile_context>

<pallas_src>
import functools

import jax
import jax.numpy as jnp
from jax.experimental import pallas as pl
from jax.experimental.pallas import tpu as pltpu


def _round_up(x: int, m: int) -> int:
    return (x + m - 1) // m * m


# ----------------------------------------------------------------------------
# Pallas kernel: the whole MLP (matmuls + ReLU + regularizer) fused.
# ----------------------------------------------------------------------------
def _beta_projection_kernel(num_layers, e_ref, r_ref, *rest):
    """rest = (w1e, w1r, b1, [w_l, b_l for l in 2..num_layers], w0, b0, out_ref).

    e_ref  : (tb, Ed)  f32 -- entity-embedding batch tile
    r_ref  : (tb, Rd)  f32 -- relation-embedding batch tile
    w*_ref : full (unpadded) f32 weights, resident in VMEM across the grid
    b*_ref : (1, N)    f32 biases
    out_ref: (tb, Ed)  f32
    """
    out_ref = rest[-1]
    w1e_ref, w1r_ref, b1_ref = rest[0], rest[1], rest[2]

    # layer1: concat([e, r]) @ W1  ==  e @ W1[:Ed] + r @ W1[Ed:]   (in-kernel)
    x = (jnp.dot(e_ref[...], w1e_ref[...], preferred_element_type=jnp.float32)
         + jnp.dot(r_ref[...], w1r_ref[...], preferred_element_type=jnp.float32))
    x = jnp.maximum(x + b1_ref[...], 0.0)                     # bias + ReLU

    idx = 3
    for _ in range(2, num_layers + 1):
        w_ref, b_ref = rest[idx], rest[idx + 1]
        idx += 2
        x = jnp.dot(x, w_ref[...], preferred_element_type=jnp.float32)
        x = jnp.maximum(x + b_ref[...], 0.0)

    # layer0: hidden -> entity_dim (no ReLU)
    w0_ref, b0_ref = rest[idx], rest[idx + 1]
    x = jnp.dot(x, w0_ref[...], preferred_element_type=jnp.float32) + b0_ref[...]

    # projection_regularizer: clamp(x + 1.0, 0.05, 1e9)
    out_ref[...] = jnp.clip(x + 1.0, 0.05, 1e9).astype(out_ref.dtype)


# ----------------------------------------------------------------------------
# Wrapper: tiling / resident weights / pallas_call
# ----------------------------------------------------------------------------
def beta_projection(e_emb, r_emb, params, *, num_layers, tb=1024,
                    single_buffer_weights=False):
    """BetaProjection forward in one Pallas call.

    params keys (weights stored (in_dim, out_dim), i.e. x @ W + b == torch
    x @ W.T + b):
      'w1' (Ed+Rd, H), 'b1' (1, H),
      'w{l}' (H, H), 'b{l}' (1, H)  for l in 2..num_layers,
      'w0' (H, Ed),  'b0' (1, Ed)
    """
    B, Ed = e_emb.shape
    Br, Rd = r_emb.shape
    assert Br == B
    H = params["b1"].shape[-1]

    # ---- batch tile: large, multiple of 8, but keep grid >= 2 when possible
    # (so both v7x TensorCores get work under dimension_semantics="parallel").
    tb_eff = max(8, min(_round_up(tb, 8),
                        _round_up(pl.cdiv(B, 2), 8),
                        _round_up(B, 8)))
    grid = pl.cdiv(B, tb_eff)   # ragged last tile handled by Pallas masking

    # ---- weights: f32, unpadded; w1 split once so layer1 needs no concat ----
    f32 = jnp.float32
    w1 = params["w1"].astype(f32)
    weight_args = [w1[:Ed], w1[Ed:], params["b1"].astype(f32)]
    for nl in range(2, num_layers + 1):
        weight_args += [params[f"w{nl}"].astype(f32),
                        params[f"b{nl}"].astype(f32)]
    weight_args += [params["w0"].astype(f32), params["b0"].astype(f32)]

    # ---- scheduler cost hint (tiny footprint: no vmem_limit override needed) -
    weight_bytes = sum(int(w.size) * w.dtype.itemsize for w in weight_args)
    flops = 2 * B * (Ed * H + Rd * H + (num_layers - 1) * H * H + H * Ed)
    bytes_accessed = B * (Ed + Rd) * 4 + weight_bytes + B * Ed * 4
    cost = pl.CostEstimate(flops=flops, transcendentals=0,
                           bytes_accessed=bytes_accessed)

    # Resident (grid-invariant) operands: constant index_map.  Optionally
    # single-buffer them (halves their VMEM footprint; only relevant for very
    # large H on v7x's 64 MiB VMEM).  Chosen statically -- no runtime probing.
    def resident(shape):
        if single_buffer_weights:
            return pl.BlockSpec(shape, lambda i: (0, 0),
                                pipeline_mode=pl.Buffered(1))
        return pl.BlockSpec(shape, lambda i: (0, 0))

    in_specs = [pl.BlockSpec((tb_eff, Ed), lambda i: (i, 0)),   # e tile
                pl.BlockSpec((tb_eff, Rd), lambda i: (i, 0))]   # r tile
    in_specs += [resident(w.shape) for w in weight_args]

    kernel = functools.partial(_beta_projection_kernel, num_layers)

    return pl.pallas_call(
        kernel,
        out_shape=jax.ShapeDtypeStruct((B, Ed), jnp.float32),   # unpadded
        grid_spec=pltpu.PrefetchScalarGridSpec(
            num_scalar_prefetch=0,
            grid=(grid,),
            in_specs=in_specs,
            out_specs=pl.BlockSpec((tb_eff, Ed), lambda i: (i, 0)),
        ),
        compiler_params=pltpu.CompilerParams(
            dimension_semantics=("parallel",),   # batch axis -> megacore
        ),
        cost_estimate=cost,
    )(e_emb.astype(f32), r_emb.astype(f32), *weight_args)


# ----------------------------------------------------------------------------
# Deterministic parameter init (matches nn.Linear shapes + xavier_uniform_)
# ----------------------------------------------------------------------------
def init_params(key, entity_dim, relation_dim, hidden_dim, num_layers):
    params = {}

    def xavier(k, fan_in, fan_out):
        # xavier_uniform_ on a (out, in) torch weight == uniform(-a, a),
        # a = sqrt(6 / (fan_in + fan_out)).  Stored here as (in, out).
        a = float(jnp.sqrt(6.0 / (fan_in + fan_out)))
        return jax.random.uniform(k, (fan_in, fan_out), jnp.float32, -a, a)

    def bias(k, fan_in, fan_out):
        # default nn.Linear bias init: uniform(-1/sqrt(fan_in), 1/sqrt(fan_in))
        b = 1.0 / float(jnp.sqrt(jnp.float32(fan_in)))
        return jax.random.uniform(k, (1, fan_out), jnp.float32, -b, b)

    keys = jax.random.split(key, 2 * (num_layers + 1))
    kidx = 0

    params["w1"] = xavier(keys[kidx], entity_dim + relation_dim, hidden_dim); kidx += 1
    params["b1"] = bias(keys[kidx], entity_dim + relation_dim, hidden_dim); kidx += 1
    for nl in range(2, num_layers + 1):
        params[f"w{nl}"] = xavier(keys[kidx], hidden_dim, hidden_dim); kidx += 1
        params[f"b{nl}"] = bias(keys[kidx], hidden_dim, hidden_dim); kidx += 1
    params["w0"] = xavier(keys[kidx], hidden_dim, entity_dim); kidx += 1
    params["b0"] = bias(keys[kidx], hidden_dim, entity_dim); kidx += 1
    return params


# Pure-JAX f32 reference for correctness checking.
def beta_projection_ref(e_emb, r_emb, params, *, num_layers):
    x = jnp.concatenate([e_emb, r_emb], axis=-1)
    x = jnp.maximum(jnp.dot(x, params["w1"]) + params["b1"], 0.0)
    for nl in range(2, num_layers + 1):
        x = jnp.maximum(jnp.dot(x, params[f"w{nl}"]) + params[f"b{nl}"], 0.0)
    x = jnp.dot(x, params["w0"]) + params["b0"]
    return jnp.clip(x + 1.0, 0.05, 1e9)


if __name__ == "__main__":
    entity_dim, relation_dim, hidden_dim, num_layers = 32, 32, 64, 2
    B = 16

    key = jax.random.PRNGKey(0)
    k_e, k_r, k_p = jax.random.split(key, 3)

    e_emb = jax.random.normal(k_e, (B, entity_dim), jnp.float32)
    r_emb = jax.random.normal(k_r, (B, relation_dim), jnp.float32)
    params = init_params(k_p, entity_dim, relation_dim, hidden_dim, num_layers)

    # Default (large) batch tile -> tile shrinks to give a 2-step parallel grid.
    out = jax.block_until_ready(
        beta_projection(e_emb, r_emb, params, num_layers=num_layers))
    ref = beta_projection_ref(e_emb, r_emb, params, num_layers=num_layers)
    assert out.shape == (B, entity_dim)
    # f32 MXU matmuls vs XLA f32 reference (accumulation-order / MXU-pass
    # differences only) -> modest tolerance.
    assert jnp.allclose(out, ref, atol=2e-2, rtol=2e-2), "mismatch vs reference"

    # Exercise the multi-step grid and a ragged (masked) last batch tile.
    B2 = 13
    out2 = jax.block_until_ready(
        beta_projection(e_emb[:B2], r_emb[:B2], params,
                        num_layers=num_layers, tb=8))
    ref2 = beta_projection_ref(e_emb[:B2], r_emb[:B2], params,
                               num_layers=num_layers)
    assert out2.shape == (B2, entity_dim)
    assert jnp.allclose(out2, ref2, atol=2e-2, rtol=2e-2), "mismatch (ragged batch)"

    print("KERNEL_OK")
</pallas_src>

<mosaic_0001>
module attributes {stable_mosaic.version = 11 : i64} {
  func.func @_beta_projection_kernel(%arg0: i32, %arg1: memref<8x32xf32, #tpu.memory_space<vmem>>, %arg2: memref<8x32xf32, #tpu.memory_space<vmem>>, %arg3: memref<32x64xf32, #tpu.memory_space<vmem>>, %arg4: memref<32x64xf32, #tpu.memory_space<vmem>>, %arg5: memref<1x64xf32, #tpu.memory_space<vmem>>, %arg6: memref<64x64xf32, #tpu.memory_space<vmem>>, %arg7: memref<1x64xf32, #tpu.memory_space<vmem>>, %arg8: memref<64x32xf32, #tpu.memory_space<vmem>>, %arg9: memref<1x32xf32, #tpu.memory_space<vmem>>, %arg10: memref<8x32xf32, #tpu.memory_space<vmem>>) attributes {dimension_semantics = [#tpu.dimension_semantics<parallel>], iteration_bounds = array<i64: 2>, scalar_prefetch = 0 : i64, scratch_operands = 0 : i64, tpu.core_type = #tpu.core_type<tc>, window_params = [{transform_indices = @transform_0, window_bounds = array<i64: 8, 32>}, {transform_indices = @transform_1, window_bounds = array<i64: 8, 32>}, {pipeline_mode = #tpu.pipeline_mode<synchronous>, transform_indices = @transform_2, window_bounds = array<i64: 32, 64>}, {pipeline_mode = #tpu.pipeline_mode<synchronous>, transform_indices = @transform_3, window_bounds = array<i64: 32, 64>}, {pipeline_mode = #tpu.pipeline_mode<synchronous>, transform_indices = @transform_4, window_bounds = array<i64: 1, 64>}, {pipeline_mode = #tpu.pipeline_mode<synchronous>, transform_indices = @transform_5, window_bounds = array<i64: 64, 64>}, {pipeline_mode = #tpu.pipeline_mode<synchronous>, transform_indices = @transform_6, window_bounds = array<i64: 1, 64>}, {pipeline_mode = #tpu.pipeline_mode<synchronous>, transform_indices = @transform_7, window_bounds = array<i64: 64, 32>}, {pipeline_mode = #tpu.pipeline_mode<synchronous>, transform_indices = @transform_8, window_bounds = array<i64: 1, 32>}, {transform_indices = @transform_9, window_bounds = array<i64: 8, 32>}]} {
    %c0 = arith.constant 0 : index
    %c0_0 = arith.constant 0 : index
    %0 = vector.load %arg1[%c0, %c0_0] : memref<8x32xf32, #tpu.memory_space<vmem>>, vector<8x32xf32>
    %c0_1 = arith.constant 0 : index
    %c0_2 = arith.constant 0 : index
    %1 = vector.load %arg3[%c0_1, %c0_2] : memref<32x64xf32, #tpu.memory_space<vmem>>, vector<32x64xf32>
    %cst = arith.constant dense<0.000000e+00> : vector<8x64xf32>
    %2 = tpu.matmul %0, %1, %cst {dimension_numbers = #tpu.dot_dimension_numbers<[1], [0], [0], [1], [0, 0, 1, 1], [], []>} : vector<8x32xf32>, vector<32x64xf32>, vector<8x64xf32> -> vector<8x64xf32>
    %c0_3 = arith.constant 0 : index
    %c0_4 = arith.constant 0 : index
    %3 = vector.load %arg2[%c0_3, %c0_4] : memref<8x32xf32, #tpu.memory_space<vmem>>, vector<8x32xf32>
    %c0_5 = arith.constant 0 : index
    %c0_6 = arith.constant 0 : index
    %4 = vector.load %arg4[%c0_5, %c0_6] : memref<32x64xf32, #tpu.memory_space<vmem>>, vector<32x64xf32>
    %cst_7 = arith.constant dense<0.000000e+00> : vector<8x64xf32>
    %5 = tpu.matmul %3, %4, %cst_7 {dimension_numbers = #tpu.dot_dimension_numbers<[1], [0], [0], [1], [0, 0, 1, 1], [], []>} : vector<8x32xf32>, vector<32x64xf32>, vector<8x64xf32> -> vector<8x64xf32>
    %6 = arith.addf %2, %5 : vector<8x64xf32>
    %c0_8 = arith.constant 0 : index
    %c0_9 = arith.constant 0 : index
    %7 = vector.load %arg5[%c0_8, %c0_9] : memref<1x64xf32, #tpu.memory_space<vmem>>, vector<1x64xf32>
    %8 = vector.broadcast %7 : vector<1x64xf32> to vector<8x64xf32>
    %9 = arith.addf %6, %8 : vector<8x64xf32>
    %cst_10 = arith.constant 0.000000e+00 : f32
    %10 = vector.broadcast %cst_10 : f32 to vector<8x64xf32>
    %11 = arith.maximumf %9, %10 : vector<8x64xf32>
    %c0_11 = arith.constant 0 : index
    %c0_12 = arith.constant 0 : index
    %12 = vector.load %arg6[%c0_11, %c0_12] : memref<64x64xf32, #tpu.memory_space<vmem>>, vector<64x64xf32>
    %cst_13 = arith.constant dense<0.000000e+00> : vector<8x64xf32>
    %13 = tpu.matmul %11, %12, %cst_13 {dimension_numbers = #tpu.dot_dimension_numbers<[1], [0], [0], [1], [0, 0, 1, 1], [], []>} : vector<8x64xf32>, vector<64x64xf32>, vector<8x64xf32> -> vector<8x64xf32>
    %c0_14 = arith.constant 0 : index
    %c0_15 = arith.constant 0 : index
    %14 = vector.load %arg7[%c0_14, %c0_15] : memref<1x64xf32, #tpu.memory_space<vmem>>, vector<1x64xf32>
    %15 = vector.broadcast %14 : vector<1x64xf32> to vector<8x64xf32>
    %16 = arith.addf %13, %15 : vector<8x64xf32>
    %cst_16 = arith.constant 0.000000e+00 : f32
    %17 = vector.broadcast %cst_16 : f32 to vector<8x64xf32>
    %18 = arith.maximumf %16, %17 : vector<8x64xf32>
    %c0_17 = arith.constant 0 : index
    %c0_18 = arith.constant 0 : index
    %19 = vector.load %arg8[%c0_17, %c0_18] : memref<64x32xf32, #tpu.memory_space<vmem>>, vector<64x32xf32>
    %cst_19 = arith.constant dense<0.000000e+00> : vector<8x32xf32>
    %20 = tpu.matmul %18, %19, %cst_19 {dimension_numbers = #tpu.dot_dimension_numbers<[1], [0], [0], [1], [0, 0, 1, 1], [], []>} : vector<8x64xf32>, vector<64x32xf32>, vector<8x32xf32> -> vector<8x32xf32>
    %c0_20 = arith.constant 0 : index
    %c0_21 = arith.constant 0 : index
    %21 = vector.load %arg9[%c0_20, %c0_21] : memref<1x32xf32, #tpu.memory_space<vmem>>, vector<1x32xf32>
    %22 = vector.broadcast %21 : vector<1x32xf32> to vector<8x32xf32>
    %23 = arith.addf %20, %22 : vector<8x32xf32>
    %cst_22 = arith.constant 1.000000e+00 : f32
    %24 = vector.broadcast %cst_22 : f32 to vector<8x32xf32>
    %25 = arith.addf %23, %24 : vector<8x32xf32>
    %cst_23 = arith.constant 5.000000e-02 : f32
    %cst_24 = arith.constant 1.000000e+09 : f32
    %26 = vector.broadcast %cst_23 : f32 to vector<8x32xf32>
    %27 = arith.maximumf %26, %25 : vector<8x32xf32>
    %28 = vector.broadcast %cst_24 : f32 to vector<8x32xf32>
    %29 = arith.minimumf %28, %27 : vector<8x32xf32>
    %c0_25 = arith.constant 0 : index
    %c0_26 = arith.constant 0 : index
    %30 = vector.load %arg10[%c0_25, %c0_26] : memref<8x32xf32, #tpu.memory_space<vmem>>, vector<8x32xf32>
    tpu.vector_store %arg10[%c0_25, %c0_26], %29 {strides = array<i32>} : memref<8x32xf32, #tpu.memory_space<vmem>>, vector<8x32xf32>,
    return
  }
  func.func @transform_0(%arg0: i32) -> (i32, i32) {
    %c0_i32 = arith.constant 0 : i32
    %c0_i32_0 = arith.constant 0 : i32
    return %arg0, %c0_i32 : i32, i32
  }
  func.func @transform_1(%arg0: i32) -> (i32, i32) {
    %c0_i32 = arith.constant 0 : i32
    %c0_i32_0 = arith.constant 0 : i32
    return %arg0, %c0_i32 : i32, i32
  }
  func.func @transform_2(%arg0: i32) -> (i32, i32) {
    %c0_i32 = arith.constant 0 : i32
    %c0_i32_0 = arith.constant 0 : i32
    %c0_i32_1 = arith.constant 0 : i32
    return %c0_i32, %c0_i32_0 : i32, i32
  }
  func.func @transform_3(%arg0: i32) -> (i32, i32) {
    %c0_i32 = arith.constant 0 : i32
    %c0_i32_0 = arith.constant 0 : i32
    %c0_i32_1 = arith.constant 0 : i32
    return %c0_i32, %c0_i32_0 : i32, i32
  }
  func.func @transform_4(%arg0: i32) -> (i32, i32) {
    %c0_i32 = arith.constant 0 : i32
    %c0_i32_0 = arith.constant 0 : i32
    %c0_i32_1 = arith.constant 0 : i32
    return %c0_i32, %c0_i32_0 : i32, i32
  }
  func.func @transform_5(%arg0: i32) -> (i32, i32) {
    %c0_i32 = arith.constant 0 : i32
    %c0_i32_0 = arith.constant 0 : i32
    %c0_i32_1 = arith.constant 0 : i32
    return %c0_i32, %c0_i32_0 : i32, i32
  }
  func.func @transform_6(%arg0: i32) -> (i32, i32) {
    %c0_i32 = arith.constant 0 : i32
    %c0_i32_0 = arith.constant 0 : i32
    %c0_i32_1 = arith.constant 0 : i32
    return %c0_i32, %c0_i32_0 : i32, i32
  }
  func.func @transform_7(%arg0: i32) -> (i32, i32) {
    %c0_i32 = arith.constant 0 : i32
    %c0_i32_0 = arith.constant 0 : i32
    %c0_i32_1 = arith.constant 0 : i32
    return %c0_i32, %c0_i32_0 : i32, i32
  }
  func.func @transform_8(%arg0: i32) -> (i32, i32) {
    %c0_i32 = arith.constant 0 : i32
    %c0_i32_0 = arith.constant 0 : i32
    %c0_i32_1 = arith.constant 0 : i32
    return %c0_i32, %c0_i32_0 : i32, i32
  }
  func.func @transform_9(%arg0: i32) -> (i32, i32) {
    %c0_i32 = arith.constant 0 : i32
    %c0_i32_0 = arith.constant 0 : i32
    return %arg0, %c0_i32 : i32, i32
  }
}

</mosaic_0001>

<bundles_post_ra>
// kernel: tpu_custom_call.1
= control target key start
LH: loop header
LB: loop body
LE: loop exit
PB: predicated region body
PF: predicated region fallthrough
CT: control target
= control target key end

     0   :  { %s1561_s0 = inlined_call_operand.hbm [shape: f32[16,32], index: 0, kind: input, shape index: {}]   ;;  %s1562_s1 = inlined_call_operand.hbm [shape: f32[16,32], index: 1, kind: input, shape index: {}]   ;;  %s1563_s2 = inlined_call_operand.vmem [shape: f32[32,64], index: 2, kind: input, shape index: {}]   ;;  %s1564_s3 = inlined_call_operand.hbm [shape: f32[32,64], index: 3, kind: input, shape index: {}]   ;;  %s1565_s4 = inlined_call_operand.vmem [shape: f32[1,64], index: 4, kind: input, shape index: {}]   ;;  %s1566_s5 = inlined_call_operand.vmem [shape: f32[64,64], index: 5, kind: input, shape index: {}]   ;;  %s1567_s6 = inlined_call_operand.vmem [shape: f32[1,64], index: 6, kind: input, shape index: {}]   ;;  %s1568_s7 = inlined_call_operand.vmem [shape: f32[64,32], index: 7, kind: input, shape index: {}]   ;;  %s1569_s8 = inlined_call_operand.vmem [shape: f32[1,32], index: 8, kind: input, shape index: {}]   ;;  %s1570_s9 = inlined_call_operand.hbm [shape: f32[16,32], index: 9, kind: output, shape index: {}]  }
   0x1   :  { %1580 = sst [smem:[#allocation18_spill]] %s1564_s3 }
   0x2   :  { %14 = vsyncpa [#allocation3], 0 }
   0x3   :  { %16 = vsyncpa [#allocation3 + $0x1], 0 }
   0x4   :  { %17 = vsyncpa [#allocation6], 0 }
   0x5   :  { %19 = vsyncpa [#allocation6 + $0x1], 0 }
   0x6   :  { %20 = vsyncpa [#allocation4], 0 }
   0x7   :  { %22 = vsyncpa [#allocation4 + $0x1], 0  ;;  %s1255_s30 = smov 0   ;;  %s1257_s10 = smov 0  }
   0x8   :  { %s1259_s11 = smov 0   ;;  %s1261_s12 = smov 0  }
   0x9 LB: > { %1581 = sst [smem:[#allocation13_spill]] %s1183_s30  ;;  %s1276_s13 = sadd.s32 4294967295, %s1195_s12   ;;  %s1195_s12 = sphi %s1261_s12, %s1603_s12   ;;  %s1191_s11 = sphi %s1259_s11, %s1605_s11   ;;  %s1187_s10 = sphi %s1257_s10, %s1607_s10   ;;  %s1183_s30 = sphi %s1255_s30, %s1606_s30  }
   0xa   : > { %1582 = sst [smem:[#allocation14_spill]] %s1191_s11  ;;  %s863_s14 = sadd.s32 4294967294, %s1195_s12  }
   0xb   : > { %p48_p0 = scmp.ne.s32.totalorder %s1187_s10, %s1183_s30  ;;  %p1576_p1 = scmp.eq.s32.totalorder %s1276_s13, 0 }
   0xc   : > { %p251_p3 = scmp.eq.s32.totalorder %s863_s14, 1  ;;  %p864_p5 = scmp.ge.s32.totalorder %s1195_s12, 1 }
   0xd   : > { %p1285_p4 = por %p1576_p1, %p48_p0  ;;  %p258_p7 = scmp.lt.s32.totalorder %s1195_s12, 3 }
   0xe   : > { %p1290_p6 = por %p251_p3, %p48_p0  ;;  %s1197_s18 = smov [#allocation7]  }
   0xf   : > { %s1583_s15 = scalar_select %p1285_p4, 1, 0 }
  0x10   : > { %s1584_s16 = scalar_select %p1290_p6, 1, 0 }
  0x11   : > { %p1295_p8 = pnand %p864_p5, %p258_p7  ;;  %s273_s19 = sshll.u32 %s1197_s18, 4  ;;  %s274_s19 = int_to_ptr.vmem [resolvable:$true] %s273_s19 }
  0x12   : > { %1585 = sst [smem:[#allocation15_spill]] %s1584_s16  ;;  %s1309_s21 = sadd.s32 1, %s1195_s12  }
  0x13   : > { %s1586_s17 = scalar_select %p1295_p8, 1, 0 }
  0x14   : > { %p985_p9 = pneg %p1295_p8  ;;  %1588 = sst [smem:[#allocation16_spill]] %s1309_s21 }
  0x15   : > { %s35_s22 = sadd.s32 1, %s1191_s11  ;;  %s32_s23 = ssub.s32 %s1195_s12, %s1309_s21 }
  0x16   : > { %p1304_p11 = pnand %p985_p9, %p1576_p1  ;;  %s1052_s24 = scalar_lea.vmem %s274_s19, 512 }
  0x17   : > { %p1053_p13 = scmp.ne.s32.totalorder %s274_s19, %s1052_s24  ;;  %p1060_p5 = scmp.lt.s32.totalorder %s274_s19, %s274_s19 }
  0x18   : > { %p1043_p12 = pneg %p1304_p11  ;;  %p1061_p7 = scmp.lt.s32.totalorder %s1052_s24, %s1052_s24 }
  0x1a   : > { %p1055_p0 = pnand %p1053_p13, %p1043_p12  ;;  %p1062_p10 = por %p1061_p7, %p1060_p5 }
  0x1c   : > { %p1056_p3 = pneg %p1055_p0 }
  0x1e   : > { %p1063_p2 = pnand %p1062_p10, %p1056_p3 }
  0x20   : > { %1066 = shalt.err (!%p1063_p2)
}
  0x21   : > { %s1198_s25 = smov 128   ;;  %s1199_s26 = smov 8  }
  0x22   : > { %s1589_s3 = sld [smem:[#allocation18_spill]]  ;;  %p33_p9 = scmp.eq.s32.totalorder %s32_s23, 0 }
  0x23   : > { %p42_p12 = scmp.ne.s32.totalorder %s1191_s11, %s1187_s10  ;;  %p43_p10 = scmp.eq.s32.totalorder %s1195_s12, 0 }
  0x24   : > { %p1001_p2 = scmp.lt.s32.totalorder %s1195_s12, 2  ;;  %p1591_p0 = scmp.eq.s32.totalorder %s1276_s13, 1 }
  0x25   : > { %s1326_s29 = scalar_select %p33_p9, %s1191_s11, %s35_s22  }
  0x26   : > { %p44_p13 = por %p43_p10, %p42_p12  ;;  %p1330_p3 = por %p1591_p0, %p42_p12 }
  0x27   : > { %1590 = sst [smem:[#allocation17_spill]] %s1326_s29  ;;  %s302_s18 = sand.u32 1, %s1191_s11  }
  0x28   : > { %988 = dma.hbm_to_vmem [thread:$0]  (!%p1304_p11), %s1589_s3, 512, %s274_s19, [#allocation6], %s1198_s25, %s1198_s25, %s1199_s26  }
  0x29   : > { %s1592_s14 = scalar_select %p1330_p3, 1, 0 }
  0x2a   : > { %s868_s24 = sshll.u32 %s1195_s12, 7  ;;  %s1336_s21 = sshll.u32 %s302_s18, 3 }
  0x2b   : > { %s1341_s19 = scalar_lea.hbm %s1561_s0, %s868_s24  ;;  %s306_s22 = scalar_lea.vmem [#allocation2], %s1336_s21 }
  0x2c   : > { %s313_s23 = sshll.u32 %s306_s22, 4  ;;  %p1344_p11 = pnand %p1001_p2, %p44_p13  ;;  %s314_s23 = int_to_ptr.vmem [resolvable:$true] %s313_s23 }
  0x2d   : > { %s1351_s28 = scalar_lea.hbm %s1562_s1, %s868_s24  ;;  %s303_s16 = scalar_lea.sflag [#allocation3], %s302_s18 }
  0x2e   : > { %s1067_s20 = scalar_lea.hbm %s1341_s19, 128  ;;  %p1069_p7 = pneg %p1344_p11 }
  0x2f   : > { %p1068_p5 = scmp.ne.s32.totalorder %s1341_s19, %s1067_s20  ;;  %s1072_s29 = scalar_lea.hbm %s1561_s0, 256 }
  0x30   : > { %p1073_p10 = scmp.lt.s32.totalorder %s1341_s19, %s1561_s0  ;;  %p1074_p2 = scmp.lt.s32.totalorder %s1072_s29, %s1067_s20 }
  0x31   : > { %p1070_p9 = pnand %p1069_p7, %p1068_p5 }
  0x32   : > { %p1075_p13 = por %p1074_p2, %p1073_p10 }
  0x33   : > { %p1071_p12 = pneg %p1070_p9 }
  0x35   : > { %p1076_p0 = pnand %p1075_p13, %p1071_p12 }
  0x37   : > { %1079 = shalt.err (!%p1076_p0)
}
  0x38   : > { %s1080_s18 = scalar_lea.vmem %s314_s23, 128  ;;  %s1200_s24 = smov [#allocation2]  }
  0x39   : > { %p1081_p1 = scmp.ne.s32.totalorder %s314_s23, %s1080_s18  ;;  %s1085_s26 = sshll.u32 %s1200_s24, 4  ;;  %s1086_s26 = int_to_ptr.vmem [resolvable:$false] %s1085_s26 }
  0x3a   : > { %s1087_s3 = scalar_lea.vmem %s1086_s26, 256  ;;  %p1088_p9 = scmp.lt.s32.totalorder %s314_s23, %s1086_s26 }
  0x3b   : > { %p1083_p6 = pnand %p1081_p1, %p1069_p7  ;;  %p1089_p3 = scmp.lt.s32.totalorder %s1087_s3, %s1080_s18 }
  0x3d   : > { %p1084_p5 = pneg %p1083_p6  ;;  %p1090_p4 = por %p1089_p3, %p1088_p9 }
  0x3f   : > { %p1091_p8 = pnand %p1090_p4, %p1084_p5 }
  0x41   : > { %1094 = shalt.err (!%p1091_p8)
}
  0x42   : > { %992 = dma.hbm_to_vmem [thread:$0]  (!%p1344_p11), %s1341_s19, 128, %s314_s23, %s303_s16  }
  0x43   : > { %s320_s30 = sand.u32 1, %s1195_s12   ;;  %s324_s11 = scalar_lea.vmem [#allocation5], %s1336_s21 }
  0x44   : > { %s331_s29 = sshll.u32 %s324_s11, 4  ;;  %s321_s27 = scalar_lea.sflag [#allocation6], %s320_s30  ;;  %s332_s29 = int_to_ptr.vmem [resolvable:$true] %s331_s29 }
  0x45   : > { %s1095_s20 = scalar_lea.hbm %s1351_s28, 128  ;;  %s1100_s24 = scalar_lea.hbm %s1562_s1, 256 }
  0x46   : > { %p1096_p1 = scmp.ne.s32.totalorder %s1351_s28, %s1095_s20  ;;  %p1101_p8 = scmp.lt.s32.totalorder %s1351_s28, %s1562_s1 }
  0x47   : > { %p1102_p3 = scmp.lt.s32.totalorder %s1100_s24, %s1095_s20 }
  0x48   : > { %p1098_p4 = pnand %p1096_p1, %p1069_p7 }
  0x49   : > { %p1103_p12 = por %p1102_p3, %p1101_p8 }
  0x4a   : > { %p1099_p6 = pneg %p1098_p4 }
  0x4c   : > { %p1104_p10 = pnand %p1103_p12, %p1099_p6 }
  0x4e   : > { %1107 = shalt.err (!%p1104_p10)
}
  0x4f   : > { %s1108_s21 = scalar_lea.vmem %s332_s29, 128  ;;  %s1201_s19 = smov [#allocation5]  }
  0x50   : > { %p1109_p2 = scmp.ne.s32.totalorder %s332_s29, %s1108_s21  ;;  %s1113_s23 = sshll.u32 %s1201_s19, 4  ;;  %s1114_s23 = int_to_ptr.vmem [resolvable:$false] %s1113_s23 }
  0x51   : > { %s1115_s16 = scalar_lea.vmem %s1114_s23, 256  ;;  %p1116_p5 = scmp.lt.s32.totalorder %s332_s29, %s1114_s23 }
  0x52   : > { %p1111_p13 = pnand %p1109_p2, %p1069_p7  ;;  %p1117_p9 = scmp.lt.s32.totalorder %s1115_s16, %s1108_s21 }
  0x54   : > { %p1112_p0 = pneg %p1111_p13  ;;  %p1118_p1 = por %p1117_p9, %p1116_p5 }
  0x56   : > { %p1119_p4 = pnand %p1118_p1, %p1112_p0 }
  0x58   : > { %1122 = shalt.err (!%p1119_p4)
}
  0x59   : > { %995 = dma.hbm_to_vmem [thread:$0]  (!%p1344_p11), %s1351_s28, 128, %s332_s29, %s321_s27  }
  0x5a   : > { %p1594_p6 = scmp.ne.s32.totalorder %s1586_s17, 0 }
  0x5b   : > { %s1396_s30 = sand.u32 (!%p1594_p6), 1, %s1187_s10   ;;  %p1595_p7 = scmp.ne.s32.totalorder (!%p1594_p6), %s1583_s15, 0 }
  0x5c   : > { %340 = sbr.rel (%p1594_p6) target bundleno = 724 (0x2d4), region = 56  ;;  %s1399_s11 = sshll.u32 (!%p1594_p6), %s1396_s30, 3 }
  0x5d   : > { %s343_s20 = scalar_lea.sflag (!%p1594_p6), [#allocation3], %s1396_s30  ;;  %s346_s22 = scalar_lea.vmem (!%p1594_p6), [#allocation2], %s1399_s11 }
  0x61   : > { %1166 = dma.done.wait (%p1595_p7), %s343_s20, 128  }
  0x62   : > { %1168 = vsyncadd (%p1595_p7), %s343_s20, 4294967168  ;;  %s351_s17 = sand.u32 1, %s1276_s13   ;;  %s355_s28 = scalar_lea.vmem [#allocation5], %s1399_s11 }
  0x63   : > { %s352_s25 = scalar_lea.sflag [#allocation6], %s351_s17 }
  0x64   : > { %1170 = dma.done.wait (%p1595_p7), %s352_s25, 128  }
  0x65   : > { %1172 = vsyncadd (%p1595_p7), %s352_s25, 4294967168  ;;  %p1596_p11 = scmp.eq.s32.totalorder %s1276_s13, 0 }
  0x67   : > { %1174 = dma.done.wait (%p1596_p11), [#allocation6], 512   ;;  %p1597_p8 = pmov %p1596_p11 }
  0x68   : > { %v1202_v0 = vmov 0.0   ;;  %vm1203_vm0 = vmmov 0   ;;  %v408_v1 = vld [vmem:[#allocation7 + $0x18] sm:$0xff]  ;;  %v407_v3 = vld [vmem:[#allocation7 + $0x10] sm:$0xff]  ;;  %v406_v5 = vld [vmem:[#allocation7 + $0x8] sm:$0xff]  ;;  %vm409_vm1 = vcmask 261120  }
  0x69   : > { %1176 = vsyncadd (%p1597_p8), [#allocation6], 4294966784  ;;  %915 = vmatprep.subr.mxu0 %v1202_v0  ;;  %926 = vmatprep.subr.mxu1 %v1202_v0  ;;  %v403_v2 = vld [vmem:[%s1563_s2 + $0x18] sm:$0xff]  ;;  %v402_v4 = vld [vmem:[%s1563_s2 + $0x10] sm:$0xff]  ;;  %vm580_vm2 = vcmask 523264   ;;  %s884_s25 = sshll.u32 %s1276_s13, 7 }
  0x6a   : > { %923 = vmatprep.mubr.msk.f32.mxu0 %vm1203_vm0, %v1202_v0  ;;  %934 = vmatprep.mubr.msk.f32.mxu1 %vm1203_vm0, %v1202_v0  ;;  %v401_v6 = vld [vmem:[%s1563_s2 + $0x8] sm:$0xff]  ;;  %v405_v7 = vld [vmem:[#allocation7] sm:$0xff]  ;;  %v404_v9 = vld [vmem:[%s355_s28] sm:$0xff]  ;;  %s398_s28 = scalar_lea.vmem [#allocation8], %s1399_s11  ;;  %s759_s18 = scalar_lea.hbm %s1570_s9, %s884_s25 }
  0x6b   : > { %916 = vmatpush3.msra.mxu0 %v408_v1  ;;  %927 = vmatpush3.msra.mxu1 %v403_v2  ;;  %v400_v8 = vld [vmem:[%s1563_s2] sm:$0xff]  ;;  %v572_v11 = vld [vmem:[%s1566_s5 + $0x38] sm:$0xff]  ;;  %v571_v12 = vld [vmem:[%s1566_s5 + $0x30] sm:$0xff]  ;;  %s761_s15 = sshll.u32 %s398_s28, 4  ;;  %s748_s24 = scalar_lea.sflag [#allocation4], %s1396_s30  ;;  %s762_s15 = int_to_ptr.vmem [resolvable:$true] %s761_s15 }
  0x6c   : > { %917 = vmatprep.subr.mxu0 %v1202_v0  ;;  %928 = vmatprep.subr.mxu1 %v1202_v0  ;;  %v399_v10 = vld [vmem:[%s346_s22] sm:$0xff]  ;;  %v568_v15 = vld [vmem:[%s1566_s5 + $0x18] sm:$0xff]  ;;  %v567_v16 = vld [vmem:[%s1566_s5 + $0x10] sm:$0xff]  ;;  %s1123_s26 = scalar_lea.vmem %s762_s15, 128  ;;  %p1598_p12 = scmp.ne.s32.totalorder %s1592_s14, 0 }
  0x6d   : > { %918 = vmatpush3.msra.mxu0 %v407_v3  ;;  %929 = vmatpush3.msra.mxu1 %v402_v4  ;;  %v570_v13 = vld [vmem:[%s1566_s5 + $0x28] sm:$0xff]  ;;  %v569_v14 = vld [vmem:[%s1566_s5 + $0x20] sm:$0xff]  ;;  %v662_v19 = vld [vmem:[%s1568_s7 + $0x38] sm:$0xff]  ;;  %p1124_p3 = scmp.ne.s32.totalorder %s762_s15, %s1123_s26  ;;  %s1204_s3 = smov [#allocation8]  }
  0x6e   : > { %919 = vmatprep.subr.mxu0 %v1202_v0  ;;  %930 = vmatprep.subr.mxu1 %v1202_v0  ;;  %v566_v17 = vld [vmem:[%s1566_s5 + $0x8] sm:$0xff]  ;;  %v565_v18 = vld [vmem:[%s1566_s5] sm:$0xff]  ;;  %v661_v20 = vld [vmem:[%s1568_s7 + $0x30] sm:$0xff]  ;;  %s1127_s21 = sshll.u32 %s1204_s3, 4  ;;  %s1128_s21 = int_to_ptr.vmem [resolvable:$false] %s1127_s21 }
  0x6f   : > { %920 = vmatpush3.msra.mxu0 %v406_v5  ;;  %931 = vmatpush3.msra.mxu1 %v401_v6  ;;  %v660_v21 = vld [vmem:[%s1568_s7 + $0x28] sm:$0xff]  ;;  %v659_v22 = vld [vmem:[%s1568_s7 + $0x20] sm:$0xff]  ;;  %v658_v23 = vld [vmem:[%s1568_s7 + $0x18] sm:$0xff]  ;;  %p1125_p10 = pnand %p1124_p3, %p1598_p12  ;;  %s1129_s13 = scalar_lea.vmem %s1128_s21, 256 }
  0x70   : > { %921 = vmatprep.subr.mxu0 %v1202_v0  ;;  %932 = vmatprep.subr.mxu1 %v1202_v0  ;;  %v878_v26 = vld [vmem:[%s1565_s4] ss:$0 sm:$0xff]  ;;  %v657_v32 = vld [vmem:[%s1568_s7 + $0x10] sm:$0xff]  ;;  %v656_v33 = vld [vmem:[%s1568_s7 + $0x8] sm:$0xff]  ;;  %p1130_p13 = scmp.lt.s32.totalorder %s762_s15, %s1128_s21  ;;  %p1131_p0 = scmp.lt.s32.totalorder %s1129_s13, %s1123_s26 }
  0x71   : > { %922 = vmatpush3.msra.mxu0 %v405_v7  ;;  %933 = vmatpush3.msra.mxu1 %v400_v8  ;;  %v655_v34 = vld [vmem:[%s1568_s7] sm:$0xff]  ;;  %p1126_p2 = pneg %p1125_p10 }
  0x72   : > { %924 = vmatmul.mubr.msk.f32.vlgmr.msra.gmra.mxu0 %vm409_vm1, %v404_v9  ;;  %935 = vmatmul.mubr.msk.f32.vlgmr.msra.gmra.mxu1 %vm409_vm1, %v399_v10  ;;  %v879_v35 = vld [vmem:[%s1567_s6] ss:$0 sm:$0xff]  ;;  %p1132_p5 = por %p1131_p0, %p1130_p13 }
  0x73   : > { %937 = vmatprep.subr.mxu0 %v1202_v0  ;;  %953 = vmatprep.mubr.msk.f32.mxu0 %vm1203_vm0, %v1202_v0  ;;  %v881_v40 = vld [vmem:[%s1569_s8] ss:$0 sm:$0xff] }
  0x74   : > { %938 = vmatpush3.msra.mxu0 %v572_v11  ;;  %956 = vmatprep.subr.mxu1 %v1202_v0  ;;  %p1133_p9 = pnand %p1132_p5, %p1126_p2 }
  0x75   : > { %939 = vmatprep.subr.mxu0 %v1202_v0  ;;  %972 = vmatprep.mubr.msk.f32.mxu1 %vm1203_vm0, %v1202_v0 }
  0x76   : > { %940 = vmatpush3.msra.mxu0 %v571_v12  ;;  %957 = vmatpush3.msra.mxu1 %v662_v19 }
  0x77   : > { %941 = vmatprep.subr.mxu0 %v1202_v0  ;;  %958 = vmatprep.subr.mxu1 %v1202_v0 }
  0x78   : > { %942 = vmatpush3.msra.mxu0 %v570_v13  ;;  %959 = vmatpush3.msra.mxu1 %v661_v20 }
  0x79   : > { %943 = vmatprep.subr.mxu0 %v1202_v0  ;;  %960 = vmatprep.subr.mxu1 %v1202_v0 }
  0x7a   : > { %944 = vmatpush3.msra.mxu0 %v569_v14  ;;  %961 = vmatpush3.msra.mxu1 %v660_v21 }
  0x7b   : > { %945 = vmatprep.subr.mxu0 %v1202_v0  ;;  %962 = vmatprep.subr.mxu1 %v1202_v0 }
  0x7c   : > { %946 = vmatpush3.msra.mxu0 %v568_v15  ;;  %963 = vmatpush3.msra.mxu1 %v659_v22 }
  0x7d   : > { %947 = vmatprep.subr.mxu0 %v1202_v0  ;;  %964 = vmatprep.subr.mxu1 %v1202_v0 }
  0x7e   : > { %948 = vmatpush3.msra.mxu0 %v567_v16  ;;  %965 = vmatpush3.msra.mxu1 %v658_v23 }
  0x7f   : > { %949 = vmatprep.subr.mxu0 %v1202_v0  ;;  %966 = vmatprep.subr.mxu1 %v1202_v0 }
  0x80   : > { %950 = vmatpush3.msra.mxu0 %v566_v17  ;;  %967 = vmatpush3.msra.mxu1 %v657_v32 }
  0x81   : > { %951 = vmatprep.subr.mxu0 %v1202_v0  ;;  %968 = vmatprep.subr.mxu1 %v1202_v0 }
  0x82   : > { %952 = vmatpush3.msra.mxu0 %v565_v18  ;;  %969 = vmatpush3.msra.mxu1 %v656_v33 }
  0x83   : > { %970 = vmatprep.subr.mxu1 %v1202_v0 }
  0x84   : > { %971 = vmatpush3.msra.mxu1 %v655_v34 }
 0x132   : > { %v479_v24 = vpop.f32.mrf.mxu0  ;;  %v552_v25 = vpop.f32.mrf.mxu1 }
 0x133   : > { %v553_v27 = vadd.f32 %v552_v25, %v479_v24 }
 0x134   : > { %v925_v28 = vpop.f32.mrf.mxu0  ;;  %v936_v29 = vpop.f32.mrf.mxu1 }
 0x135   : > { %v563_v30 = vadd.f32 %v878_v26, %v553_v27 }
 0x137   : > { %v564_v31 = vmax.f32 %v563_v30, 0.0 }
 0x139   : > { %954 = vmatmul.mubr.msk.f32.vlgmr.msra.gmra.mxu0 %vm580_vm2, %v564_v31 }
 0x1f9   : > { %v650_v36 = vpop.f32.mrf.mxu0 }
 0x1fa   : > { %v651_v37 = vadd.f32 %v879_v35, %v650_v36 }
 0x1fb   : > { %v955_v38 = vpop.f32.mrf.mxu0 }
 0x1fc   : > { %v654_v39 = vmax.f32 %v651_v37, 0.0 }
 0x1fe   : > { %973 = vmatmul.mubr.msk.f32.vlgmr.msra.gmra.mxu1 %vm580_vm2, %v654_v39 }
 0x2be   : > { %v739_v41 = vpop.f32.mrf.mxu1 }
 0x2bf   : > { %v740_v42 = vadd.f32 %v881_v40, %v739_v41 }
 0x2c0   : > { %v974_v43 = vpop.f32.mrf.mxu1 }
 0x2c1   : > { %v743_v44 = vadd.f32 1.0, %v740_v42 }
 0x2c3   : > { %v744_v45 = vmax.f32 %v743_v44, 0.05 }
 0x2c5   : > { %v745_v46 = vmin.f32 %v744_v45, 1e+09 }
 0x2c7   : > { %746 = vst.msk [vmem:[%s398_s28] sm:$0xff] %vm409_vm1, %v745_v46 }
 0x2c8   : > { %1136 = shalt.err (!%p1133_p9)
}
 0x2c9   : > { %s1137_s11 = scalar_lea.hbm %s759_s18, 128  ;;  %s1141_s23 = scalar_lea.hbm %s1570_s9, 256 }
 0x2ca   : > { %p1138_p1 = scmp.ne.s32.totalorder %s759_s18, %s1137_s11  ;;  %p1142_p7 = scmp.lt.s32.totalorder %s759_s18, %s1570_s9 }
 0x2cb   : > { %p1143_p11 = scmp.lt.s32.totalorder %s1141_s23, %s1137_s11 }
 0x2cc   : > { %p1139_p4 = pnand %p1138_p1, %p1598_p12 }
 0x2cd   : > { %p1144_p8 = por %p1143_p11, %p1142_p7 }
 0x2ce   : > { %p1140_p6 = pneg %p1139_p4 }
 0x2d0   : > { %p1145_p3 = pnand %p1144_p8, %p1140_p6 }
 0x2d2   : > { %1148 = shalt.err (!%p1145_p3)
}
 0x2d3   : > { %983 = dma.vmem_to_hbm [thread:$0]  (%p1598_p12), %s762_s15, 128, %s759_s18, %s748_s24  }
 0x2d4 PF: > { %s1599_s22 = sld [smem:[#allocation13_spill]]  ;;  %p1602_p2 = scmp.ge.s32.totalorder %s1195_s12, 2 }
 0x2d5   : > { %s1600_s17 = sld [smem:[#allocation15_spill]] }
 0x2da   : > { %s773_s25 = sand.u32 1, %s1599_s22  }
 0x2db   : > { %p1601_p10 = scmp.ne.s32.totalorder %s1600_s17, 0  ;;  %s774_s28 = scalar_lea.sflag [#allocation4], %s773_s25 }
 0x2dd   : > { %p997_p13 = pnand %p1602_p2, %p1601_p10 }
 0x2df   : > { %p998_p0 = pneg %p997_p13 }
 0x2e1   : > { %1178 = dma.done.wait (%p998_p0), %s774_s28, 128  }
 0x2e2   : > { %1180 = vsyncadd (%p998_p0), %s774_s28, 4294967168  ;;  %s1603_s12 = sld [smem:[#allocation16_spill]]  ;;  %s1606_s30 = smov %s1187_s10 }
 0x2e3   : > { %s1604_s29 = sld [smem:[#allocation14_spill]] }
 0x2e4   : > { %s1605_s11 = sld [smem:[#allocation17_spill]] }
 0x2e8   : > { %p25_p5 = scmp.ge.s32.totalorder %s1603_s12, 4  }
 0x2e9   : > { %s1607_s10 = smov %s1604_s29 }
 0x2ea   :  { %27 = sbr.rel (!%p25_p5) target bundleno = 9 (0x9), region = 118 }
 0x2ef   :  { %779 = vsyncpa [#allocation3], 1 }
 0x2f0   :  { %781 = vsyncpa [#allocation3 + $0x1], 1 }
 0x2f1   :  { %782 = vsyncpa [#allocation6], 1 }
 0x2f2   :  { %784 = vsyncpa [#allocation6 + $0x1], 1 }
 0x2f3   :  { %785 = vsyncpa [#allocation4], 1 }
 0x2f4   :  { %787 = vsyncpa [#allocation4 + $0x1], 1 }

</bundles_post_ra>
